<compile_context>
chip_gen: v6e
topology: v6e:2x2x1
jax: 0.10.0
libtpu: 0.0.40
codegen_flags: <defaults>
</compile_context>

<pallas_src>
import functools

import jax
import jax.numpy as jnp
from jax.experimental import pallas as pl
from jax.experimental.pallas import tpu as pltpu


def _round_up(n, m):
    return ((n + m - 1) // m) * m


def _mlp_kernel(p_ref, x_ref, o_ref):
    """Unrolled VPU MLP (no MXU).

    p_ref: SMEM f32[19] = [w1 (4x3 row-major, [in,out]) | b1 (3) | w2 (3) | b2 (1)]
    x_ref: VMEM f32[4, SB, 128] -- feature plane k is x_ref[k]; batch occupies
           the (sublane, lane) = (SB, 128) slab (fully dense vregs).
    o_ref: VMEM f32[SB, 128]    -- logits in the same batch layout.
    """
    # Load the four feature planes once; each is a dense (SB, 128) slab.
    x0 = x_ref[0]
    x1 = x_ref[1]
    x2 = x_ref[2]
    x3 = x_ref[3]

    out = None
    for j in range(3):  # 3 hidden units, statically unrolled
        h = (p_ref[0 * 3 + j] * x0
             + p_ref[1 * 3 + j] * x1
             + p_ref[2 * 3 + j] * x2
             + p_ref[3 * 3 + j] * x3
             + p_ref[12 + j])                    # + b1[j]
        h = jnp.maximum(h, 0.0)                  # ReLU
        term = p_ref[15 + j] * h                 # * w2[j]
        out = term if out is None else out + term
    o_ref[...] = out + p_ref[18]                 # + b2


@functools.partial(jax.jit, static_argnames=("block_batch",))
def binary_classification_forward(x, w1, b1, w2, b2, *, block_batch=8192):
    """x: [B, 4] float32 -> logits [B, 1] float32.

    block_batch: rows per grid step (multiple of 1024). 2K-8K amortizes the
    ~0.35us per-step overhead while keeping double-buffered tiles tiny
    (~40 B/row of VMEM), well under the 32 MiB scoped limit on all chips.
    """
    B = x.shape[0]

    # Batch tile = (SB sublanes) x (128 lanes); pad B so the grid is exact.
    tb = min(block_batch, _round_up(B, 1024))
    b_pad = _round_up(B, tb)
    sb = tb // 128
    grid = (b_pad // tb,)

    # Feature-major, batch-on-(sublane,lane) layout: [4, B_pad/128, 128].
    # Single wrapper-side transpose/pad/reshape (layout plumbing, not compute).
    x_t = jnp.transpose(x.astype(jnp.float32))                  # [4, B]
    x_t = jnp.pad(x_t, ((0, 0), (0, b_pad - B)))                # [4, B_pad]
    x_r = x_t.reshape(4, b_pad // 128, 128)

    # Flat parameter vector for SMEM: w1 row-major [in, out], b1, w2, b2.
    params = jnp.concatenate([
        w1.reshape(-1), b1.reshape(-1), w2.reshape(-1), b2.reshape(-1)
    ]).astype(jnp.float32)                                      # (19,)

    out_slab = pl.pallas_call(
        _mlp_kernel,
        out_shape=jax.ShapeDtypeStruct((b_pad // 128, 128), jnp.float32),
        grid=grid,
        in_specs=[
            # 19 scalars -> SMEM, resident for the whole grid.
            pl.BlockSpec(memory_space=pltpu.MemorySpace.SMEM),
            # Batch-tiled, lane-dense input slab.
            pl.BlockSpec((4, sb, 128), lambda i: (0, i, 0)),
        ],
        out_specs=pl.BlockSpec((sb, 128), lambda i: (i, 0)),
        compiler_params=pltpu.CompilerParams(
            dimension_semantics=("parallel",),      # megacore-shardable on v7x
        ),
        cost_estimate=pl.CostEstimate(
            flops=2 * 15 * b_pad,                   # 15 MACs per sample
            transcendentals=0,
            bytes_accessed=b_pad * 4 * 4 + b_pad * 4 + params.size * 4,
        ),
    )(params, x_r)

    # Un-plumb the layout: [B_pad/128, 128] -> [B_pad, 1] -> drop padded rows.
    return out_slab.reshape(b_pad, 1)[:B]


def init_params(key):
    """Deterministic init matching nn.Linear's default U(-1/sqrt(fan_in), +)."""
    k1, k2, k3, k4 = jax.random.split(key, 4)
    bound1 = 1.0 / jnp.sqrt(4.0)
    bound2 = 1.0 / jnp.sqrt(3.0)
    # Stored as [in_features, out_features] (transpose of PyTorch's [out, in]).
    w1 = jax.random.uniform(k1, (4, 3), jnp.float32, -bound1, bound1)
    b1 = jax.random.uniform(k2, (1, 3), jnp.float32, -bound1, bound1)
    w2 = jax.random.uniform(k3, (3, 1), jnp.float32, -bound2, bound2)
    b2 = jax.random.uniform(k4, (1, 1), jnp.float32, -bound2, bound2)
    return w1, b1, w2, b2


if __name__ == "__main__":
    key = jax.random.PRNGKey(0)
    kx, kp = jax.random.split(key)

    # Small batch of 4-dim latent vectors (the module's Linear(4, ...) input).
    B = 8
    x = jax.random.normal(kx, (B, 4), jnp.float32)
    w1, b1, w2, b2 = init_params(kp)

    out = binary_classification_forward(x, w1, b1, w2, b2)
    out = jax.block_until_ready(out)

    # Pure-JAX reference of the same forward pass (highest precision so the
    # comparison is not polluted by default-precision matmul rounding).
    h_ref = jnp.maximum(
        jnp.dot(x, w1, precision=jax.lax.Precision.HIGHEST) + b1, 0.0)
    ref = jnp.dot(h_ref, w2, precision=jax.lax.Precision.HIGHEST) + b2

    assert out.shape == (B, 1)
    assert out.dtype == jnp.float32
    assert jnp.allclose(out, ref, atol=1e-5, rtol=1e-5)

    print("KERNEL_OK")
</pallas_src>

<mosaic_0001>
module attributes {stable_mosaic.version = 11 : i64} {
  func.func @_mlp_kernel(%arg0: i32, %arg1: memref<19xf32, #tpu.memory_space<smem>>, %arg2: memref<4x8x128xf32, #tpu.memory_space<vmem>>, %arg3: memref<8x128xf32, #tpu.memory_space<vmem>>) attributes {dimension_semantics = [#tpu.dimension_semantics<parallel>], iteration_bounds = array<i64: 1>, scalar_prefetch = 0 : i64, scratch_operands = 0 : i64, tpu.core_type = #tpu.core_type<tc>, window_params = [{transform_indices = @transform_0, window_bounds = array<i64: 19>}, {transform_indices = @transform_1, window_bounds = array<i64: 4, 8, 128>}, {transform_indices = @transform_2, window_bounds = array<i64: 8, 128>}]} {
    %c0 = arith.constant 0 : index
    %c0_0 = arith.constant 0 : index
    %c0_1 = arith.constant 0 : index
    %0 = vector.load %arg2[%c0, %c0_0, %c0_1] : memref<4x8x128xf32, #tpu.memory_space<vmem>>, vector<1x8x128xf32>
    %1 = vector.shape_cast %0 : vector<1x8x128xf32> to vector<8x128xf32>
    %c1 = arith.constant 1 : index
    %c0_2 = arith.constant 0 : index
    %c0_3 = arith.constant 0 : index
    %2 = vector.load %arg2[%c1, %c0_2, %c0_3] : memref<4x8x128xf32, #tpu.memory_space<vmem>>, vector<1x8x128xf32>
    %3 = vector.shape_cast %2 : vector<1x8x128xf32> to vector<8x128xf32>
    %c2 = arith.constant 2 : index
    %c0_4 = arith.constant 0 : index
    %c0_5 = arith.constant 0 : index
    %4 = vector.load %arg2[%c2, %c0_4, %c0_5] : memref<4x8x128xf32, #tpu.memory_space<vmem>>, vector<1x8x128xf32>
    %5 = vector.shape_cast %4 : vector<1x8x128xf32> to vector<8x128xf32>
    %c3 = arith.constant 3 : index
    %c0_6 = arith.constant 0 : index
    %c0_7 = arith.constant 0 : index
    %6 = vector.load %arg2[%c3, %c0_6, %c0_7] : memref<4x8x128xf32, #tpu.memory_space<vmem>>, vector<1x8x128xf32>
    %7 = vector.shape_cast %6 : vector<1x8x128xf32> to vector<8x128xf32>
    %c0_8 = arith.constant 0 : index
    %8 = memref.load %arg1[%c0_8] : memref<19xf32, #tpu.memory_space<smem>>
    %9 = vector.broadcast %8 : f32 to vector<8x128xf32>
    %10 = arith.mulf %9, %1 : vector<8x128xf32>
    %c3_9 = arith.constant 3 : index
    %11 = memref.load %arg1[%c3_9] : memref<19xf32, #tpu.memory_space<smem>>
    %12 = vector.broadcast %11 : f32 to vector<8x128xf32>
    %13 = arith.mulf %12, %3 : vector<8x128xf32>
    %14 = arith.addf %10, %13 : vector<8x128xf32>
    %c6 = arith.constant 6 : index
    %15 = memref.load %arg1[%c6] : memref<19xf32, #tpu.memory_space<smem>>
    %16 = vector.broadcast %15 : f32 to vector<8x128xf32>
    %17 = arith.mulf %16, %5 : vector<8x128xf32>
    %18 = arith.addf %14, %17 : vector<8x128xf32>
    %c9 = arith.constant 9 : index
    %19 = memref.load %arg1[%c9] : memref<19xf32, #tpu.memory_space<smem>>
    %20 = vector.broadcast %19 : f32 to vector<8x128xf32>
    %21 = arith.mulf %20, %7 : vector<8x128xf32>
    %22 = arith.addf %18, %21 : vector<8x128xf32>
    %c12 = arith.constant 12 : index
    %23 = memref.load %arg1[%c12] : memref<19xf32, #tpu.memory_space<smem>>
    %24 = vector.broadcast %23 : f32 to vector<8x128xf32>
    %25 = arith.addf %22, %24 : vector<8x128xf32>
    %cst = arith.constant 0.000000e+00 : f32
    %26 = vector.broadcast %cst : f32 to vector<8x128xf32>
    %27 = arith.maximumf %25, %26 : vector<8x128xf32>
    %c15 = arith.constant 15 : index
    %28 = memref.load %arg1[%c15] : memref<19xf32, #tpu.memory_space<smem>>
    %29 = vector.broadcast %28 : f32 to vector<8x128xf32>
    %30 = arith.mulf %29, %27 : vector<8x128xf32>
    %c1_10 = arith.constant 1 : index
    %31 = memref.load %arg1[%c1_10] : memref<19xf32, #tpu.memory_space<smem>>
    %32 = vector.broadcast %31 : f32 to vector<8x128xf32>
    %33 = arith.mulf %32, %1 : vector<8x128xf32>
    %c4 = arith.constant 4 : index
    %34 = memref.load %arg1[%c4] : memref<19xf32, #tpu.memory_space<smem>>
    %35 = vector.broadcast %34 : f32 to vector<8x128xf32>
    %36 = arith.mulf %35, %3 : vector<8x128xf32>
    %37 = arith.addf %33, %36 : vector<8x128xf32>
    %c7 = arith.constant 7 : index
    %38 = memref.load %arg1[%c7] : memref<19xf32, #tpu.memory_space<smem>>
    %39 = vector.broadcast %38 : f32 to vector<8x128xf32>
    %40 = arith.mulf %39, %5 : vector<8x128xf32>
    %41 = arith.addf %37, %40 : vector<8x128xf32>
    %c10 = arith.constant 10 : index
    %42 = memref.load %arg1[%c10] : memref<19xf32, #tpu.memory_space<smem>>
    %43 = vector.broadcast %42 : f32 to vector<8x128xf32>
    %44 = arith.mulf %43, %7 : vector<8x128xf32>
    %45 = arith.addf %41, %44 : vector<8x128xf32>
    %c13 = arith.constant 13 : index
    %46 = memref.load %arg1[%c13] : memref<19xf32, #tpu.memory_space<smem>>
    %47 = vector.broadcast %46 : f32 to vector<8x128xf32>
    %48 = arith.addf %45, %47 : vector<8x128xf32>
    %cst_11 = arith.constant 0.000000e+00 : f32
    %49 = vector.broadcast %cst_11 : f32 to vector<8x128xf32>
    %50 = arith.maximumf %48, %49 : vector<8x128xf32>
    %c16 = arith.constant 16 : index
    %51 = memref.load %arg1[%c16] : memref<19xf32, #tpu.memory_space<smem>>
    %52 = vector.broadcast %51 : f32 to vector<8x128xf32>
    %53 = arith.mulf %52, %50 : vector<8x128xf32>
    %54 = arith.addf %30, %53 : vector<8x128xf32>
    %c2_12 = arith.constant 2 : index
    %55 = memref.load %arg1[%c2_12] : memref<19xf32, #tpu.memory_space<smem>>
    %56 = vector.broadcast %55 : f32 to vector<8x128xf32>
    %57 = arith.mulf %56, %1 : vector<8x128xf32>
    %c5 = arith.constant 5 : index
    %58 = memref.load %arg1[%c5] : memref<19xf32, #tpu.memory_space<smem>>
    %59 = vector.broadcast %58 : f32 to vector<8x128xf32>
    %60 = arith.mulf %59, %3 : vector<8x128xf32>
    %61 = arith.addf %57, %60 : vector<8x128xf32>
    %c8 = arith.constant 8 : index
    %62 = memref.load %arg1[%c8] : memref<19xf32, #tpu.memory_space<smem>>
    %63 = vector.broadcast %62 : f32 to vector<8x128xf32>
    %64 = arith.mulf %63, %5 : vector<8x128xf32>
    %65 = arith.addf %61, %64 : vector<8x128xf32>
    %c11 = arith.constant 11 : index
    %66 = memref.load %arg1[%c11] : memref<19xf32, #tpu.memory_space<smem>>
    %67 = vector.broadcast %66 : f32 to vector<8x128xf32>
    %68 = arith.mulf %67, %7 : vector<8x128xf32>
    %69 = arith.addf %65, %68 : vector<8x128xf32>
    %c14 = arith.constant 14 : index
    %70 = memref.load %arg1[%c14] : memref<19xf32, #tpu.memory_space<smem>>
    %71 = vector.broadcast %70 : f32 to vector<8x128xf32>
    %72 = arith.addf %69, %71 : vector<8x128xf32>
    %cst_13 = arith.constant 0.000000e+00 : f32
    %73 = vector.broadcast %cst_13 : f32 to vector<8x128xf32>
    %74 = arith.maximumf %72, %73 : vector<8x128xf32>
    %c17 = arith.constant 17 : index
    %75 = memref.load %arg1[%c17] : memref<19xf32, #tpu.memory_space<smem>>
    %76 = vector.broadcast %75 : f32 to vector<8x128xf32>
    %77 = arith.mulf %76, %74 : vector<8x128xf32>
    %78 = arith.addf %54, %77 : vector<8x128xf32>
    %c18 = arith.constant 18 : index
    %79 = memref.load %arg1[%c18] : memref<19xf32, #tpu.memory_space<smem>>
    %80 = vector.broadcast %79 : f32 to vector<8x128xf32>
    %81 = arith.addf %78, %80 : vector<8x128xf32>
    %c0_14 = arith.constant 0 : index
    %c0_15 = arith.constant 0 : index
    %82 = vector.load %arg3[%c0_14, %c0_15] : memref<8x128xf32, #tpu.memory_space<vmem>>, vector<8x128xf32>
    tpu.vector_store %arg3[%c0_14, %c0_15], %81 {strides = array<i32>} : memref<8x128xf32, #tpu.memory_space<vmem>>, vector<8x128xf32>,
    return
  }
  func.func @transform_0(%arg0: i32) -> i32 {
    %c0_i32 = arith.constant 0 : i32
    %c0_i32_0 = arith.constant 0 : i32
    return %c0_i32 : i32
  }
  func.func @transform_1(%arg0: i32) -> (i32, i32, i32) {
    %c0_i32 = arith.constant 0 : i32
    %c0_i32_0 = arith.constant 0 : i32
    %c0_i32_1 = arith.constant 0 : i32
    return %c0_i32, %arg0, %c0_i32_0 : i32, i32, i32
  }
  func.func @transform_2(%arg0: i32) -> (i32, i32) {
    %c0_i32 = arith.constant 0 : i32
    %c0_i32_0 = arith.constant 0 : i32
    return %arg0, %c0_i32 : i32, i32
  }
}

</mosaic_0001>

<bundles_post_ra>
// kernel: binary_classification_forward.1
= control target key start
LH: loop header
LB: loop body
LE: loop exit
PB: predicated region body
PF: predicated region fallthrough
CT: control target
= control target key end

     0   :  { %7 = vsyncpa [#allocation3], 0  ;;  %s190_s0 = inlined_call_operand.vmem [shape: f32[19], index: 0, kind: input, shape index: {}]   ;;  %s191_s1 = inlined_call_operand.vmem [shape: f32[4,8,128], index: 1, kind: input, shape index: {}]   ;;  %s192_s2 = inlined_call_operand.vmem [shape: f32[8,128], index: 2, kind: output, shape index: {}]  }
   0x1   :  { %s14_s11 = sshll.u32 %s190_s0, 4  ;;  %s15_s11 = int_to_ptr.vmem [resolvable:$true] %s14_s11 }
   0x2   :  { %s130_s12 = scalar_lea.vmem %s15_s11, 16  ;;  %p135_p1 = scmp.lt.s32.totalorder %s15_s11, %s15_s11 }
   0x3   :  { %p131_p0 = scmp.ne.s32.totalorder %s15_s11, %s130_s12  ;;  %p136_p2 = scmp.lt.s32.totalorder %s130_s12, %s130_s12 }
   0x5   :  { %p137_p3 = por %p136_p2, %p135_p1 }
   0x7   :  { %p138_p4 = pnand %p137_p3, %p131_p0 }
   0x9   :  { %141 = shalt.err (!%p138_p4)
}
   0xa   :  { %s144_s13 = smov [#allocation2]  }
   0xb   :  { %17 = dma.vmem_to_smem %s15_s11, 16, %s144_s13, [#allocation3]  }
   0xc   :  { %142 = dma.done.wait [#allocation3], 16  }
   0xd   :  { %143 = vsyncadd [#allocation3], 4294967280 }
   0xe   :  { %23 = sfence }
   0xf   :  { %s31_s14 = sld [smem:[#allocation2]]  ;;  %v24_v0 = vld [vmem:[%s191_s1] sm:$0xff]  ;;  %v108_v1 = vld [vmem:[%s191_s1 + $0x8] sm:$0xff]  ;;  %v109_v2 = vld [vmem:[%s191_s1 + $0x10] sm:$0xff] }
  0x10   :  { %s111_s15 = sld [smem:[#allocation2 + $0x3]]  ;;  %v110_v4 = vld [vmem:[%s191_s1 + $0x18] sm:$0xff] }
  0x11   :  { %s112_s16 = sld [smem:[#allocation2 + $0x6]] }
  0x12   :  { %s113_s17 = sld [smem:[#allocation2 + $0x9]] }
  0x13   :  { %s166_s0 = sld [smem:[#allocation2 + $0xc]] }
  0x14   :  { %s171_s22 = sld [smem:[#allocation2 + $0xf]] }
  0x15   :  { %v32_v3 = vstv %s31_s14  ;;  %s116_s25 = sld [smem:[#allocation2 + $0x1]] }
  0x16   :  { %v33_v5 = vmul.f32 %v32_v3, %v24_v0  ;;  %v35_v6 = vstv %s111_s15  ;;  %s117_s28 = sld [smem:[#allocation2 + $0x4]] }
  0x17   :  { %v36_v7 = vmul.f32 %v108_v1, %v35_v6  ;;  %v39_v8 = vstv %s112_s16  ;;  %s118_s29 = sld [smem:[#allocation2 + $0x7]] }
  0x18   :  { %v40_v9 = vmul.f32 %v109_v2, %v39_v8  ;;  %v43_v10 = vstv %s113_s17  ;;  %s119_s30 = sld [smem:[#allocation2 + $0xa]] }
  0x19   :  { %v37_v11 = vadd.f32 %v36_v7, %v33_v5  ;;  %v44_v12 = vmul.f32 %v110_v4, %v43_v10  ;;  %s179_s3 = sld [smem:[#allocation2 + $0xd]]  ;;  %v47_v20 = vstv %s166_s0 }
  0x1a   :  { %s181_s4 = sld [smem:[#allocation2 + $0x10]]  ;;  %v51_v40 = vstv %s171_s22 }
  0x1b   :  { %v41_v13 = vadd.f32 %v40_v9, %v37_v11  ;;  %v54_v14 = vstv %s116_s25  ;;  %s122_s5 = sld [smem:[#allocation2 + $0x2]] }
  0x1c   :  { %v55_v15 = vmul.f32 %v54_v14, %v24_v0  ;;  %v57_v16 = vstv %s117_s28  ;;  %s123_s1 = sld [smem:[#allocation2 + $0x5]] }
  0x1d   :  { %v45_v17 = vadd.f32 %v44_v12, %v41_v13  ;;  %v58_v18 = vmul.f32 %v108_v1, %v57_v16  ;;  %v61_v19 = vstv %s118_s29  ;;  %s124_s6 = sld [smem:[#allocation2 + $0x8]] }
  0x1e   :  { %v62_v21 = vmul.f32 %v109_v2, %v61_v19  ;;  %v65_v22 = vstv %s119_s30  ;;  %s125_s7 = sld [smem:[#allocation2 + $0xb]] }
  0x1f   :  { %v59_v23 = vadd.f32 %v58_v18, %v55_v15  ;;  %v66_v24 = vmul.f32 %v110_v4, %v65_v22  ;;  %s126_s8 = sld [smem:[#allocation2 + $0xe]]  ;;  %v48_v25 = vadd.f32 %v47_v20, %v45_v17  ;;  %v69_v28 = vstv %s179_s3 }
  0x20   :  { %s127_s9 = sld [smem:[#allocation2 + $0x11]]  ;;  %v73_v41 = vstv %s181_s4 }
  0x21   :  { %v63_v26 = vadd.f32 %v62_v21, %v59_v23  ;;  %v77_v27 = vstv %s122_s5  ;;  %v49_v36 = vmax.f32 %v48_v25, 0.0  ;;  %s128_s10 = sld [smem:[#allocation2 + $0x12]] }
  0x22   :  { %v78_v29 = vmul.f32 %v77_v27, %v24_v0  ;;  %v80_v30 = vstv %s123_s1 }
  0x23   :  { %v67_v31 = vadd.f32 %v66_v24, %v63_v26  ;;  %v81_v32 = vmul.f32 %v108_v1, %v80_v30  ;;  %v84_v33 = vstv %s124_s6  ;;  %v52_v45 = vmul.f32 %v51_v40, %v49_v36 }
  0x24   :  { %v85_v34 = vmul.f32 %v109_v2, %v84_v33  ;;  %v88_v35 = vstv %s125_s7 }
  0x25   :  { %v70_v37 = vadd.f32 %v69_v28, %v67_v31  ;;  %v82_v38 = vadd.f32 %v81_v32, %v78_v29  ;;  %v89_v39 = vmul.f32 %v110_v4, %v88_v35  ;;  %v92_v44 = vstv %s126_s8 }
  0x26   :  { %v96_v49 = vstv %s127_s9 }
  0x27   :  { %v71_v42 = vmax.f32 %v70_v37, 0.0  ;;  %v86_v43 = vadd.f32 %v85_v34, %v82_v38  ;;  %v100_v53 = vstv %s128_s10 }
  0x29   :  { %v74_v46 = vmul.f32 %v73_v41, %v71_v42  ;;  %v90_v47 = vadd.f32 %v89_v39, %v86_v43 }
  0x2b   :  { %v93_v48 = vadd.f32 %v92_v44, %v90_v47  ;;  %v75_v50 = vadd.f32 %v74_v46, %v52_v45 }
  0x2d   :  { %v94_v51 = vmax.f32 %v93_v48, 0.0 }
  0x2f   :  { %v97_v52 = vmul.f32 %v96_v49, %v94_v51 }
  0x31   :  { %v98_v54 = vadd.f32 %v97_v52, %v75_v50 }
  0x33   :  { %v101_v55 = vadd.f32 %v100_v53, %v98_v54 }
  0x35   :  { %102 = vst [vmem:[%s192_s2] sm:$0xff] %v101_v55 }
  0x36   :  { %107 = vsyncpa [#allocation3], 1 }

</bundles_post_ra>
